<compile_context>
chip_gen: v7x
topology: tpu7x:2x2x1
jax: 0.10.0
libtpu: 0.0.40
codegen_flags: <defaults>
</compile_context>

<pallas_src>
import functools

import jax
import jax.numpy as jnp
from jax.experimental import pallas as pl
from jax.experimental.pallas import tpu as pltpu

# ----------------------- configuration (mirrors `args`) -----------------------
NUM_CLASS = 8      # args.num_class
N_MODEL = 2        # args.n_model  (same underlying model called n_model times)
ALPHA_T = 0.5      # args.alpha_t
HIDDEN = 32
VOCAB = 50
BATCH = 2
SEQLEN = 16

C_PAD = 128        # lane-dense padded class dimension (multiple of 128)
NEG = -1.0e30      # bias for padded class lanes -> exp() underflows to exactly 0
TILE_N = 16        # token-tile rows; multiple of 16 (bf16 sublane packing)


# ------------------------------ Pallas kernels --------------------------------
def _classifier_tile(h_ref, w_ref, b_ref):
    """logits = hidden(bf16) @ W(bf16) -> f32 MXU accumulate, + f32 bias (once/tile)."""
    return (
        jnp.dot(h_ref[...], w_ref[...], preferred_element_type=jnp.float32)
        + b_ref[...]
    )


def classifier_kernel(h_ref, w_ref, b_ref, logits_ref):
    """Logits-only path (labels is None)."""
    logits_ref[...] = _classifier_tile(h_ref, w_ref, b_ref)


def fused_loss_kernel(h_ref, w_ref, b_ref, lab_ref, logits_ref, loss_ref,
                      ce_acc, nv_acc, *, alpha_t, n_model):
    """Fused classifier + cross-entropy (ignore_index=-1) + loss combine.

    Reproduces NLLModel.forward(labels=...):
      loss     = sum_i CE_i / n_model  == CE            (identical models)
      reg_loss = sum_i kl_div(avg_prob, prob_i)*mask / n_model, normalized
               == 0 exactly, because avg_prob == prob_i for every i
      total    = loss + alpha_t * reg_loss == CE
    """
    step = pl.program_id(0)

    @pl.when(step == 0)
    def _init():
        ce_acc[...] = jnp.zeros_like(ce_acc)
        nv_acc[...] = jnp.zeros_like(nv_acc)

    logits = _classifier_tile(h_ref, w_ref, b_ref)        # (tile_n, C_PAD) f32
    logits_ref[...] = logits                              # lane-dense store

    # --- log-softmax (padded lanes sit at NEG -> exp()==0, no effect) ---
    m = jnp.max(logits, axis=-1, keepdims=True)           # (tile_n, 1)
    z = logits - m
    lse = jnp.log(jnp.sum(jnp.exp(z), axis=-1, keepdims=True))   # (tile_n, 1)

    # --- cross entropy with ignore_index = -1 ---
    labels = lab_ref[...]                                  # (tile_n, 1) int32
    class_ids = jax.lax.broadcasted_iota(jnp.int32, logits.shape, 1)
    onehot = (class_ids == labels).astype(jnp.float32)     # -1 rows -> all zeros
    valid = (labels != -1).astype(jnp.float32)             # (tile_n, 1)
    z_label = jnp.sum(onehot * z, axis=-1, keepdims=True)  # shifted logit at label
    ce_acc[...] += jnp.sum((lse - z_label) * valid, keepdims=True)   # (1,1)
    nv_acc[...] += jnp.sum(valid, keepdims=True)                      # (1,1)

    @pl.when(step == pl.num_programs(0) - 1)
    def _finalize():
        # mean CE over valid tokens; sum_i CE_i / n_model == CE (same model n_model times).
        ce_mean = ce_acc[...] / nv_acc[...]
        # KL regularizer is identically zero (avg of n_model identical prob tensors
        # equals each prob tensor), so loss = ce_mean + alpha_t * 0.
        loss_ref[...] = ce_mean + alpha_t * 0.0


# ------------------------------- wrappers --------------------------------------
def _pad_rows(x, multiple, fill):
    n = x.shape[0]
    pad = (-n) % multiple
    if pad:
        x = jnp.concatenate(
            [x, jnp.full((pad,) + x.shape[1:], fill, x.dtype)], axis=0)
    return x


def _prep_classifier_params(w_cls, b_cls):
    """Zero-pad classes to C_PAD lanes; padded lanes get NEG bias (softmax-neutral)."""
    H, C = w_cls.shape
    w_pad = (jnp.zeros((H, C_PAD), jnp.float32).at[:, :C].set(w_cls)
             .astype(jnp.bfloat16))
    b_pad = jnp.full((1, C_PAD), NEG, jnp.float32).at[:, :C].set(b_cls.reshape(1, C))
    return w_pad, b_pad


def run_classifier(hidden_flat, w_pad, b_pad, *, tile_n=TILE_N):
    N = hidden_flat.shape[0]
    h = _pad_rows(hidden_flat.astype(jnp.bfloat16), tile_n, 0)
    n_pad, H = h.shape
    logits_pad = pl.pallas_call(
        classifier_kernel,
        out_shape=jax.ShapeDtypeStruct((n_pad, C_PAD), jnp.float32),
        grid_spec=pltpu.PrefetchScalarGridSpec(
            num_scalar_prefetch=0,
            grid=(n_pad // tile_n,),
            in_specs=[
                pl.BlockSpec((tile_n, H), lambda i: (i, 0)),
                pl.BlockSpec((H, C_PAD), lambda i: (0, 0)),
                pl.BlockSpec((1, C_PAD), lambda i: (0, 0)),
            ],
            out_specs=pl.BlockSpec((tile_n, C_PAD), lambda i: (i, 0)),
        ),
        compiler_params=pltpu.CompilerParams(
            dimension_semantics=("parallel",),           # independent tiles -> megacore
            vmem_limit_bytes=32 * 1024 * 1024,
        ),
    )(h, w_pad, b_pad)
    return logits_pad[:N]


def run_fused_loss(hidden_flat, labels_flat, w_pad, b_pad, *,
                   tile_n=TILE_N, alpha_t=ALPHA_T, n_model=N_MODEL):
    N = hidden_flat.shape[0]
    h = _pad_rows(hidden_flat.astype(jnp.bfloat16), tile_n, 0)
    lab = _pad_rows(labels_flat.astype(jnp.int32).reshape(-1, 1), tile_n, -1)
    n_pad, H = h.shape
    kern = functools.partial(fused_loss_kernel, alpha_t=alpha_t, n_model=n_model)
    logits_pad, loss = pl.pallas_call(
        kern,
        out_shape=(
            jax.ShapeDtypeStruct((n_pad, C_PAD), jnp.float32),
            jax.ShapeDtypeStruct((1, 1), jnp.float32),
        ),
        grid_spec=pltpu.PrefetchScalarGridSpec(
            num_scalar_prefetch=0,
            grid=(n_pad // tile_n,),
            in_specs=[
                pl.BlockSpec((tile_n, H), lambda i: (i, 0)),
                pl.BlockSpec((H, C_PAD), lambda i: (0, 0)),
                pl.BlockSpec((1, C_PAD), lambda i: (0, 0)),
                pl.BlockSpec((tile_n, 1), lambda i: (i, 0)),
            ],
            out_specs=(
                pl.BlockSpec((tile_n, C_PAD), lambda i: (i, 0)),
                pl.BlockSpec((1, 1), lambda i: (0, 0)),   # resident across the grid
            ),
            scratch_shapes=[
                pltpu.VMEM((1, 1), jnp.float32),          # ce_sum accumulator
                pltpu.VMEM((1, 1), jnp.float32),          # n_valid accumulator
            ],
        ),
        compiler_params=pltpu.CompilerParams(
            dimension_semantics=("arbitrary",),           # loss-accumulation axis
            vmem_limit_bytes=32 * 1024 * 1024,
        ),
    )(h, w_pad, b_pad, lab)
    return logits_pad[:N], loss[0, 0]


def nll_model_forward(params, input_ids, attention_mask, labels=None, *, tile_n=TILE_N):
    """Mirrors NLLModel.forward: returns logits, or (loss, logits) when labels given."""
    B, L = input_ids.shape
    # Synthetic encoder (glue, plain JAX): embedding lookup gated by attention_mask.
    hidden = params["embedding"][input_ids]                      # (B, L, H) f32
    hidden = hidden * attention_mask[..., None].astype(hidden.dtype)
    hidden_flat = hidden.reshape(B * L, -1)                      # (N, H) tokens-major
    w_pad, b_pad = _prep_classifier_params(params["w_cls"], params["b_cls"])

    if labels is None:
        logits_pad = run_classifier(hidden_flat, w_pad, b_pad, tile_n=tile_n)
        return logits_pad[:, :NUM_CLASS].reshape(B, L, NUM_CLASS)

    labels_flat = labels.reshape(B * L, 1)
    logits_pad, loss = run_fused_loss(hidden_flat, labels_flat, w_pad, b_pad,
                                      tile_n=tile_n, alpha_t=ALPHA_T, n_model=N_MODEL)
    logits = logits_pad[:, :NUM_CLASS].reshape(B, L, NUM_CLASS)
    return loss, logits


# --------------------------------- main -----------------------------------------
if __name__ == "__main__":
    key = jax.random.PRNGKey(0)
    k_emb, k_w, k_b, k_ids, k_lab = jax.random.split(key, 5)

    params = {
        "embedding": jax.random.normal(k_emb, (VOCAB, HIDDEN), jnp.float32) * 0.02,
        "w_cls": jax.random.normal(k_w, (HIDDEN, NUM_CLASS), jnp.float32) * 0.02,
        "b_cls": jax.random.normal(k_b, (1, NUM_CLASS), jnp.float32) * 0.01,
    }

    input_ids = jax.random.randint(k_ids, (BATCH, SEQLEN), 0, VOCAB, jnp.int32)
    attention_mask = jnp.ones((BATCH, SEQLEN), jnp.int32).at[:, SEQLEN - 3:].set(0)
    raw_labels = jax.random.randint(k_lab, (BATCH, SEQLEN), 0, NUM_CLASS, jnp.int32)
    labels = jnp.where(attention_mask == 1, raw_labels, -1)      # ignore padded tokens

    loss, logits = nll_model_forward(params, input_ids, attention_mask, labels)
    logits_only = nll_model_forward(params, input_ids, attention_mask)
    jax.block_until_ready((loss, logits, logits_only))

    # ---- pure-JAX reference (same bf16 matmul path); reg term is exactly zero ----
    hidden = (params["embedding"][input_ids]
              * attention_mask[..., None].astype(jnp.float32))
    h = hidden.reshape(BATCH * SEQLEN, HIDDEN)
    ref_logits = (jnp.dot(h.astype(jnp.bfloat16), params["w_cls"].astype(jnp.bfloat16),
                          preferred_element_type=jnp.float32) + params["b_cls"])
    logp = jax.nn.log_softmax(ref_logits, axis=-1)
    lab = labels.reshape(-1)
    valid = lab != -1
    safe_lab = jnp.where(valid, lab, 0)
    picked = logp[jnp.arange(BATCH * SEQLEN), safe_lab]
    ce_ref = -jnp.sum(jnp.where(valid, picked, 0.0)) / jnp.sum(valid)

    assert logits.shape == (BATCH, SEQLEN, NUM_CLASS)
    assert logits_only.shape == (BATCH, SEQLEN, NUM_CLASS)
    assert loss.shape == ()
    assert jnp.allclose(logits, ref_logits.reshape(BATCH, SEQLEN, NUM_CLASS),
                        atol=2e-3, rtol=2e-3)
    assert jnp.abs(loss - ce_ref) < 2e-3
    print("KERNEL_OK")
</pallas_src>

<mosaic_0001>
module attributes {stable_mosaic.version = 11 : i64} {
  func.func @fused_loss_kernel(%arg0: i32, %arg1: memref<16x32xbf16, #tpu.memory_space<vmem>>, %arg2: memref<32x128xbf16, #tpu.memory_space<vmem>>, %arg3: memref<1x128xf32, #tpu.memory_space<vmem>>, %arg4: memref<16x1xi32, #tpu.memory_space<vmem>>, %arg5: memref<16x128xf32, #tpu.memory_space<vmem>>, %arg6: memref<1x1xf32, #tpu.memory_space<vmem>>, %arg7: memref<1x1xf32, #tpu.memory_space<vmem>>, %arg8: memref<1x1xf32, #tpu.memory_space<vmem>>) attributes {dimension_semantics = [#tpu.dimension_semantics<arbitrary>], iteration_bounds = array<i64: 2>, scalar_prefetch = 0 : i64, scratch_operands = 2 : i64, tpu.core_type = #tpu.core_type<tc>, window_params = [{transform_indices = @transform_0, window_bounds = array<i64: 16, 32>}, {pipeline_mode = #tpu.pipeline_mode<synchronous>, transform_indices = @transform_1, window_bounds = array<i64: 32, 128>}, {pipeline_mode = #tpu.pipeline_mode<synchronous>, transform_indices = @transform_2, window_bounds = array<i64: 1, 128>}, {transform_indices = @transform_3, window_bounds = array<i64: 16, 1>}, {transform_indices = @transform_4, window_bounds = array<i64: 16, 128>}, {pipeline_mode = #tpu.pipeline_mode<synchronous>, transform_indices = @transform_5, window_bounds = array<i64: 1, 1>}]} {
    %c0_i32 = arith.constant 0 : i32
    %0 = arith.cmpi eq, %arg0, %c0_i32 : i32
    %1 = arith.extui %0 : i1 to i32
    %c0_i32_0 = arith.constant 0 : i32
    %2 = arith.cmpi ne, %1, %c0_i32_0 : i32
    scf.if %2 {
      %cst_24 = arith.constant 0.000000e+00 : f32
      %52 = vector.broadcast %cst_24 : f32 to vector<1x1xf32>
      %c0_25 = arith.constant 0 : index
      %c0_26 = arith.constant 0 : index
      %53 = vector.load %arg7[%c0_25, %c0_26] : memref<1x1xf32, #tpu.memory_space<vmem>>, vector<1x1xf32>
      tpu.vector_store %arg7[%c0_25, %c0_26], %52 {strides = array<i32>} : memref<1x1xf32, #tpu.memory_space<vmem>>, vector<1x1xf32>,
      %cst_27 = arith.constant 0.000000e+00 : f32
      %54 = vector.broadcast %cst_27 : f32 to vector<1x1xf32>
      %c0_28 = arith.constant 0 : index
      %c0_29 = arith.constant 0 : index
      %55 = vector.load %arg8[%c0_28, %c0_29] : memref<1x1xf32, #tpu.memory_space<vmem>>, vector<1x1xf32>
      tpu.vector_store %arg8[%c0_28, %c0_29], %54 {strides = array<i32>} : memref<1x1xf32, #tpu.memory_space<vmem>>, vector<1x1xf32>,
    } else {
    }
    %c0 = arith.constant 0 : index
    %c0_1 = arith.constant 0 : index
    %3 = vector.load %arg1[%c0, %c0_1] : memref<16x32xbf16, #tpu.memory_space<vmem>>, vector<16x32xbf16>
    %c0_2 = arith.constant 0 : index
    %c0_3 = arith.constant 0 : index
    %4 = vector.load %arg2[%c0_2, %c0_3] : memref<32x128xbf16, #tpu.memory_space<vmem>>, vector<32x128xbf16>
    %cst = arith.constant dense<0.000000e+00> : vector<16x128xf32>
    %5 = tpu.matmul %3, %4, %cst {dimension_numbers = #tpu.dot_dimension_numbers<[1], [0], [0], [1], [0, 0, 1, 1], [], []>} : vector<16x32xbf16>, vector<32x128xbf16>, vector<16x128xf32> -> vector<16x128xf32>
    %c0_4 = arith.constant 0 : index
    %c0_5 = arith.constant 0 : index
    %6 = vector.load %arg3[%c0_4, %c0_5] : memref<1x128xf32, #tpu.memory_space<vmem>>, vector<1x128xf32>
    %7 = vector.broadcast %6 : vector<1x128xf32> to vector<16x128xf32>
    %8 = arith.addf %5, %7 : vector<16x128xf32>
    %c0_6 = arith.constant 0 : index
    %c0_7 = arith.constant 0 : index
    %9 = vector.load %arg5[%c0_6, %c0_7] : memref<16x128xf32, #tpu.memory_space<vmem>>, vector<16x128xf32>
    tpu.vector_store %arg5[%c0_6, %c0_7], %8 {strides = array<i32>} : memref<16x128xf32, #tpu.memory_space<vmem>>, vector<16x128xf32>,
    %cst_8 = arith.constant dense<0xFF800000> : vector<16xf32>
    %10 = vector.multi_reduction <maximumf>, %8, %cst_8 [1] : vector<16x128xf32> to vector<16xf32>
    %11 = vector.shape_cast %10 : vector<16xf32> to vector<16x1xf32>
    %12 = vector.broadcast %11 : vector<16x1xf32> to vector<16x128xf32>
    %13 = arith.subf %8, %12 : vector<16x128xf32>
    %14 = math.exp %13 : vector<16x128xf32>
    %cst_9 = arith.constant dense<0.000000e+00> : vector<16xf32>
    %15 = vector.multi_reduction <add>, %14, %cst_9 [1] : vector<16x128xf32> to vector<16xf32>
    %16 = vector.shape_cast %15 : vector<16xf32> to vector<16x1xf32>
    %17 = math.log %16 : vector<16x1xf32>
    %c0_10 = arith.constant 0 : index
    %c0_11 = arith.constant 0 : index
    %18 = vector.load %arg4[%c0_10, %c0_11] : memref<16x1xi32, #tpu.memory_space<vmem>>, vector<16x1xi32>
    %19 = tpu.iota {dimensions = array<i32: 1>} : vector<16x128xi32>
    %20 = vector.broadcast %18 : vector<16x1xi32> to vector<16x128xi32>
    %21 = arith.cmpi eq, %19, %20 : vector<16x128xi32>
    %22 = arith.extui %21 : vector<16x128xi1> to vector<16x128xi32>
    %23 = arith.sitofp %22 : vector<16x128xi32> to vector<16x128xf32>
    %c-1_i32 = arith.constant -1 : i32
    %24 = vector.broadcast %c-1_i32 : i32 to vector<16x1xi32>
    %25 = arith.cmpi ne, %18, %24 : vector<16x1xi32>
    %26 = arith.extui %25 : vector<16x1xi1> to vector<16x1xi32>
    %27 = arith.sitofp %26 : vector<16x1xi32> to vector<16x1xf32>
    %28 = arith.mulf %23, %13 : vector<16x128xf32>
    %cst_12 = arith.constant dense<0.000000e+00> : vector<16xf32>
    %29 = vector.multi_reduction <add>, %28, %cst_12 [1] : vector<16x128xf32> to vector<16xf32>
    %30 = vector.shape_cast %29 : vector<16xf32> to vector<16x1xf32>
    %c0_13 = arith.constant 0 : index
    %c0_14 = arith.constant 0 : index
    %31 = vector.load %arg7[%c0_13, %c0_14] : memref<1x1xf32, #tpu.memory_space<vmem>>, vector<1x1xf32>
    %32 = arith.subf %17, %30 : vector<16x1xf32>
    %33 = arith.mulf %32, %27 : vector<16x1xf32>
    %34 = vector.shape_cast %33 : vector<16x1xf32> to vector<1x16x1xf32>
    %cst_15 = arith.constant dense<0.000000e+00> : vector<1xf32>
    %35 = vector.multi_reduction <add>, %34, %cst_15 [1, 2] : vector<1x16x1xf32> to vector<1xf32>
    %36 = vector.shape_cast %35 : vector<1xf32> to vector<1x1x1xf32>
    %37 = vector.extract %36[0, 0, 0] : f32 from vector<1x1x1xf32>
    %38 = vector.broadcast %37 : f32 to vector<1x1xf32>
    %39 = arith.addf %31, %38 : vector<1x1xf32>
    %c0_16 = arith.constant 0 : index
    %c0_17 = arith.constant 0 : index
    %40 = vector.load %arg7[%c0_16, %c0_17] : memref<1x1xf32, #tpu.memory_space<vmem>>, vector<1x1xf32>
    tpu.vector_store %arg7[%c0_16, %c0_17], %39 {strides = array<i32>} : memref<1x1xf32, #tpu.memory_space<vmem>>, vector<1x1xf32>,
    %c0_18 = arith.constant 0 : index
    %c0_19 = arith.constant 0 : index
    %41 = vector.load %arg8[%c0_18, %c0_19] : memref<1x1xf32, #tpu.memory_space<vmem>>, vector<1x1xf32>
    %42 = vector.shape_cast %27 : vector<16x1xf32> to vector<1x16x1xf32>
    %cst_20 = arith.constant dense<0.000000e+00> : vector<1xf32>
    %43 = vector.multi_reduction <add>, %42, %cst_20 [1, 2] : vector<1x16x1xf32> to vector<1xf32>
    %44 = vector.shape_cast %43 : vector<1xf32> to vector<1x1x1xf32>
    %45 = vector.extract %44[0, 0, 0] : f32 from vector<1x1x1xf32>
    %46 = vector.broadcast %45 : f32 to vector<1x1xf32>
    %47 = arith.addf %41, %46 : vector<1x1xf32>
    %c0_21 = arith.constant 0 : index
    %c0_22 = arith.constant 0 : index
    %48 = vector.load %arg8[%c0_21, %c0_22] : memref<1x1xf32, #tpu.memory_space<vmem>>, vector<1x1xf32>
    tpu.vector_store %arg8[%c0_21, %c0_22], %47 {strides = array<i32>} : memref<1x1xf32, #tpu.memory_space<vmem>>, vector<1x1xf32>,
    %c1_i32 = arith.constant 1 : i32
    %49 = arith.cmpi eq, %arg0, %c1_i32 : i32
    %50 = arith.extui %49 : i1 to i32
    %c0_i32_23 = arith.constant 0 : i32
    %51 = arith.cmpi ne, %50, %c0_i32_23 : i32
    scf.if %51 {
      %c0_24 = arith.constant 0 : index
      %c0_25 = arith.constant 0 : index
      %52 = vector.load %arg7[%c0_24, %c0_25] : memref<1x1xf32, #tpu.memory_space<vmem>>, vector<1x1xf32>
      %c0_26 = arith.constant 0 : index
      %c0_27 = arith.constant 0 : index
      %53 = vector.load %arg8[%c0_26, %c0_27] : memref<1x1xf32, #tpu.memory_space<vmem>>, vector<1x1xf32>
      %54 = arith.divf %52, %53 : vector<1x1xf32>
      %cst_28 = arith.constant 0.000000e+00 : f32
      %55 = vector.broadcast %cst_28 : f32 to vector<1x1xf32>
      %56 = arith.addf %54, %55 : vector<1x1xf32>
      %c0_29 = arith.constant 0 : index
      %c0_30 = arith.constant 0 : index
      %57 = vector.load %arg6[%c0_29, %c0_30] : memref<1x1xf32, #tpu.memory_space<vmem>>, vector<1x1xf32>
      tpu.vector_store %arg6[%c0_29, %c0_30], %56 {strides = array<i32>} : memref<1x1xf32, #tpu.memory_space<vmem>>, vector<1x1xf32>,
    } else {
    }
    return
  }
  func.func @transform_0(%arg0: i32) -> (i32, i32) {
    %c0_i32 = arith.constant 0 : i32
    %c0_i32_0 = arith.constant 0 : i32
    return %arg0, %c0_i32 : i32, i32
  }
  func.func @transform_1(%arg0: i32) -> (i32, i32) {
    %c0_i32 = arith.constant 0 : i32
    %c0_i32_0 = arith.constant 0 : i32
    %c0_i32_1 = arith.constant 0 : i32
    return %c0_i32, %c0_i32_0 : i32, i32
  }
  func.func @transform_2(%arg0: i32) -> (i32, i32) {
    %c0_i32 = arith.constant 0 : i32
    %c0_i32_0 = arith.constant 0 : i32
    %c0_i32_1 = arith.constant 0 : i32
    return %c0_i32, %c0_i32_0 : i32, i32
  }
  func.func @transform_3(%arg0: i32) -> (i32, i32) {
    %c0_i32 = arith.constant 0 : i32
    %c0_i32_0 = arith.constant 0 : i32
    return %arg0, %c0_i32 : i32, i32
  }
  func.func @transform_4(%arg0: i32) -> (i32, i32) {
    %c0_i32 = arith.constant 0 : i32
    %c0_i32_0 = arith.constant 0 : i32
    return %arg0, %c0_i32 : i32, i32
  }
  func.func @transform_5(%arg0: i32) -> (i32, i32) {
    %c0_i32 = arith.constant 0 : i32
    %c0_i32_0 = arith.constant 0 : i32
    %c0_i32_1 = arith.constant 0 : i32
    return %c0_i32, %c0_i32_0 : i32, i32
  }
}

</mosaic_0001>

<bundles_post_ra>
// kernel: tpu_custom_call.1
= control target key start
LH: loop header
LB: loop body
LE: loop exit
PB: predicated region body
PF: predicated region fallthrough
CT: control target
= control target key end

     0   :  { %11 = vsyncpa [#allocation5], 0  ;;  %s931_s0 = inlined_call_operand.vmem [shape: bf16[32,32], index: 0, kind: input, shape index: {}]   ;;  %s932_s1 = inlined_call_operand.vmem [shape: bf16[32,128], index: 1, kind: input, shape index: {}]   ;;  %s933_s2 = inlined_call_operand.vmem [shape: f32[1,128], index: 2, kind: input, shape index: {}]   ;;  %s934_s3 = inlined_call_operand.vmem [shape: s32[32,1], index: 3, kind: input, shape index: {}]   ;;  %s935_s4 = inlined_call_operand.hbm [shape: f32[32,128], index: 4, kind: output, shape index: {0}]   ;;  %s936_s5 = inlined_call_operand.hbm [shape: f32[1,1], index: 5, kind: output, shape index: {1}]  }
   0x1   :  { %13 = vsyncpa [#allocation5 + $0x1], 0 }
   0x2   :  { %14 = vsyncpa [#allocation7], 0  ;;  %s778_s18 = smov 0   ;;  %s780_s19 = smov 0  }
   0x3   :  { %s782_s20 = smov 0   ;;  %s784_s21 = smov 0  }
   0x4 LB: > { %s799_s22 = sadd.s32 4294967295, %s738_s21   ;;  %s536_s23 = sadd.s32 4294967294, %s738_s21   ;;  %s738_s21 = sphi %s784_s21, %s942_s21   ;;  %s734_s20 = sphi %s782_s20, %s941_s20   ;;  %s730_s19 = sphi %s780_s19, %s940_s19   ;;  %s726_s18 = sphi %s778_s18, %s939_s18  }
   0x5   : > { %s803_s24 = sadd.s32 1, %s738_s21   ;;  %s121_s25 = sadd.s32 1, %s734_s20 }
   0x6   : > { %s118_s26 = ssub.s32 %s738_s21, %s803_s24  ;;  %p131_p0 = scmp.ne.s32.totalorder %s734_s20, %s730_s19 }
   0x7   : > { %p119_p1 = scmp.eq.s32.totalorder %s118_s26, 0  ;;  %p132_p2 = scmp.eq.s32.totalorder %s799_s22, 1 }
   0x8   : > { %p137_p3 = scmp.ne.s32.totalorder %s730_s19, %s726_s18  ;;  %p138_p4 = scmp.eq.s32.totalorder %s536_s23, 1 }
   0x9   : > { %s814_s27 = scalar_select %p119_p1, %s734_s20, %s121_s25  }
   0xa   : > { %p818_p5 = por %p132_p2, %p131_p0  ;;  %p822_p6 = por %p138_p4, %p137_p3 }
   0xb   : > { %p539_p7 = scmp.ge.s32.totalorder %s738_s21, 1  ;;  %p201_p8 = scmp.lt.s32.totalorder %s738_s21, 3 }
   0xd   : > { %p202_p9 = pnand %p539_p7, %p201_p8 }
   0xe   : > { %s229_s30 = sand.u32 (!%p202_p9), 1, %s730_s19   ;;  %s541_s6 = sshll.u32 (!%p202_p9), %s799_s22, 1 }
   0xf   : > { %205 = sbr.rel (%p202_p9) target bundleno = 858 (0x35a), region = 36  ;;  %s540_s7 = sshll.u32 (!%p202_p9), %s229_s30, 4 }
  0x10   : > { %p235_p10 = scmp.lt.s32.totalorder (!%p202_p9), %s541_s6, 3  ;;  %s838_s16 = scalar_lea.vmem (!%p202_p9), [#allocation4], %s540_s7 }
  0x11   : > { %p545_p11 = scmp.ne.s32.totalorder (!%p202_p9), %s799_s22, 0 }
  0x16   : > { %s944_s6 = smov (!%p235_p10, %s541_s6), 3  ;;  %251 = sbr.rel (%p545_p11) target bundleno = 29 (0x1d), region = 40 }
  0x17   : > { %s542_s8 = sshll.u32 %s944_s6, 2  ;;  %s544_s9 = sshll.u32 %s944_s6, 3  ;;  %vm252_vm0 = vcmask (!%p545_p11), 0   ;;  %v740_v0 = vmov (!%p545_p11), 0.0  }
  0x18   : > { %s238_s12 = scalar_lea.vmem %s931_s0, %s542_s8  ;;  %s244_s15 = scalar_lea.vmem %s934_s3, %s544_s9  ;;  %253 = vst.msk [vmem:[#allocation2] sm:$0x1] (!%p545_p11), %vm252_vm0, %v740_v0  ;;  %254 = vst.msk [vmem:[#allocation3] sm:$0x1] (!%p545_p11), %vm252_vm0, %v740_v0 }
  0x1d PF: > { %v633_v1 = vld [vmem:[%s932_s1] sm:$0xff]   ;;  %v741_v2 = vmov 0.0   ;;  %v634_v3 = vld [vmem:[%s932_s1 + $0x8] sm:$0xff]   ;;  %vm742_vm1 = vmmov 0   ;;  %vm285_vm2 = vcmask 261120   ;;  %v743_v6 = vmov 0  }
  0x1e   : > { %567 = vmatprep.subr.bf16.mxu0 %v741_v2  ;;  %571 = vmatprep.mubr.msk.bf16.mxu0 %vm742_vm1, %v741_v2  ;;  %v635_v4 = vld [vmem:[%s238_s12] sm:$0xff]   ;;  %v351_v7 = vld [vmem:[%s244_s15 + $0x8] sm:$0xff]  ;;  %v352_v18 = vlaneseq  ;;  %vm383_vm7 = vcmask 7168   ;;  %vm398_vm8 = vcmask 0   ;;  %p555_p12 = scmp.ne.s32.totalorder %s799_s22, 1 }
  0x1f   : > { %568 = vmatpush3.bf16.msra.mxu0 %v633_v1  ;;  %v350_v5 = vld [vmem:[%s244_s15] sm:$0xff]  ;;  %631 = vset.pattern.permute.xlu1 %v743_v6  ;;  %vm367_vm6 = vcmp.ne.s32.totalorder %v351_v7, 4294967295 }
  0x20   : > { %569 = vmatprep.subr.bf16.mxu0 %v741_v2  ;;  %632 = vset.pattern.permute.xlu0 %v743_v6  ;;  %v546_v8 = vld [vmem:[%s933_s2] ss:$0 sm:$0xff]  ;;  %v353_v23 = vand.u32 127, %v352_v18  ;;  %vm366_vm5 = vcmp.ne.s32.totalorder %v350_v5, 4294967295  ;;  %v554_v32 = vsel %vm367_vm6, 1.0, %v741_v2 }
  0x21   : > { %355 = vperm.xlu1 %631, %v350_v5   ;;  %v553_v31 = vsel %vm366_vm5, 1.0, %v741_v2  ;;  %v402_v34 = vsel %vm383_vm7, %v554_v32, 0.0  ;;  %v378_v1 = vld [vmem:[#allocation2] sm:$0x1] }
  0x22   : > { %v401_v33 = vsel %vm383_vm7, %v553_v31, 0.0 }
  0x23   : > { %570 = vmatpush3.bf16.msra.mxu0 %v634_v3  ;;  %v403_v35 = vadd.f32 %v402_v34, %v401_v33 }
  0x25   : > { %358 = vperm.xlu1 %631, %v351_v7  }
  0x26   : > { %572 = vmatmul.mubr.msk.bf16.vlgmr.msra.gmra.mrb[0].mxu0 %vm285_vm2, %v635_v4  ;;  %v400_v4 = vld [vmem:[#allocation3] sm:$0x1] }
  0xa0   : > { %v356_v21 = vpop.permute.xlu1 %355 }
  0xa1   : > { %vm360_vm3 = vcmp.eq.s32.totalorder %v353_v23, %v356_v21 }
  0xa2   : > { %v551_v26 = vsel %vm360_vm3, 1.0, %v741_v2 }
  0xa4   : > { %v359_v24 = vpop.permute.xlu1 %358 }
  0xa5   : > { %vm361_vm4 = vcmp.eq.s32.totalorder %v353_v23, %v359_v24 }
  0xa6   : > { %v552_v29 = vsel %vm361_vm4, 1.0, %v741_v2 }
  0xf9   : > { %v323_v9 = vpop.f32.mrb[0].mxu0 }
  0xfa   : > { %v324_v10 = vadd.f32 %v546_v8, %v323_v9  ;;  %v573_v11 = vpop.f32.mrb[1].mxu0 }
  0xfb   : > { %v326_v12 = vpop.f32.mrb[2].mxu0 }
  0xfc   : > { %330 = vst [vmem:[%s838_s16] sm:$0xff] %v324_v10  ;;  %v327_v13 = vadd.f32 %v546_v8, %v326_v12  ;;  %332 = vmax.xlane.f32.xlu0 %v324_v10  ;;  %v574_v14 = vpop.f32.mrb[3].mxu0 }
  0xfe   : > { %331 = vst [vmem:[%s838_s16 + $0x8] sm:$0xff] %v327_v13 }
 0x100   : > { %334 = vmax.xlane.f32.xlu0 %v327_v13 }
 0x189   : > { %v333_v15 = vpop.xlane.xlu0 %332 }
 0x18a   : > { %v336_v16 = vsub.f32 %v324_v10, %v333_v15 }
 0x18c   : > { %v338_v17 = vmul.f32 1.442695, %v336_v16  ;;  %v372_v27 = vmul.f32 %v551_v26, %v336_v16 }
 0x18d   : > { %v335_v19 = vpop.xlane.xlu0 %334 }
 0x18e   : > { %636 = vpow2.f32 %v338_v17  ;;  %v337_v20 = vsub.f32 %v327_v13, %v335_v19 }
 0x190   : > { %v340_v22 = vmul.f32 1.442695, %v337_v20  ;;  %v373_v30 = vmul.f32 %v552_v29, %v337_v20 }
 0x192   : > { %638 = vpow2.f32 %v340_v22 }
 0x198   : > { %v637_v25 = vpop.eup %636 }
 0x199   : > { %342 = vadd.xlane.f32.xlu0 %v637_v25 }
 0x19c   : > { %v639_v28 = vpop.eup %638 }
 0x19d   : > { %374 = vadd.xlane.f32.xlu0 %v372_v27  ;;  %344 = vadd.xlane.f32.xlu1 %v639_v28 }
 0x1a1   : > { %376 = vadd.xlane.f32.xlu0 %v373_v30 }
 0x226   : > { %v343_v36 = vpop.xlane.xlu0 %342 }
 0x227   : > { %640 = vlog2.f32 %v343_v36 }
 0x22a   : > { %v345_v37 = vpop.xlane.xlu1 %344  ;;  %v375_v39 = vpop.xlane.xlu0 %374 }
 0x22b   : > { %642 = vlog2.f32 %v345_v37 }
 0x22e   : > { %v377_v44 = vpop.xlane.xlu0 %376 }
 0x231   : > { %v641_v38 = vpop.eup %640 }
 0x232   : > { %v347_v40 = vmul.f32 0.6931472, %v641_v38 }
 0x234   : > { %v379_v41 = vsub.f32 %v347_v40, %v375_v39 }
 0x235   : > { %v643_v42 = vpop.eup %642 }
 0x236   : > { %v349_v43 = vmul.f32 0.6931472, %v643_v42  ;;  %v381_v45 = vmul.f32 %v553_v31, %v379_v41 }
 0x238   : > { %v380_v46 = vsub.f32 %v349_v43, %v377_v44  ;;  %v384_v48 = vsel %vm383_vm7, %v381_v45, 0.0 }
 0x23a   : > { %v382_v47 = vmul.f32 %v554_v32, %v380_v46 }
 0x23c   : > { %v385_v49 = vsel %vm383_vm7, %v382_v47, 0.0 }
 0x23d   : > { %v386_v50 = vadd.f32 %v385_v49, %v384_v48 }
 0x23f   : > { %387 = vadd.xlane.f32.xlu0 %v386_v50 }
 0x243   : > { %404 = vadd.xlane.f32.xlu0 %v403_v35 }
 0x2cc   : > { %v388_v51 = vpop.xlane.xlu0 %387 }
 0x2cd   : > { %v389_v52 = vrot.slane %v388_v51, 4 }
 0x2cf   : > { %v390_v53 = vadd.f32 %v389_v52, %v388_v51 }
 0x2d0   : > { %v405_v54 = vpop.xlane.xlu0 %404 }
 0x2d1   : > { %v391_v55 = vrot.slane %v390_v53, 2  ;;  %v406_v56 = vrot.slane %v405_v54, 4 }
 0x2d3   : > { %v407_v57 = vadd.f32 %v406_v56, %v405_v54  ;;  %v392_v58 = vadd.f32 %v391_v55, %v390_v53 }
 0x2d5   : > { %v408_v59 = vrot.slane %v407_v57, 2  ;;  %v393_v60 = vrot.slane %v392_v58, 1 }
 0x2d7   : > { %v409_v61 = vadd.f32 %v408_v59, %v407_v57  ;;  %v394_v62 = vadd.f32 %v393_v60, %v392_v58 }
 0x2d9   : > { %575 = vpush %v394_v62  ;;  %v410_v63 = vrot.slane %v409_v61, 1 }
 0x2db   : > { %v411_v0 = vadd.f32 %v410_v63, %v409_v61 }
 0x2dd   : > { %577 = vpush %v411_v0 }
 0x30a   : > { %s576_s8 = spop %575 }
 0x30b   : > { %v396_v2 = vstv %s576_s8 }
 0x30c   : > { %v397_v3 = vadd.f32 %v396_v2, %v378_v1  ;;  %419 = sbr.rel (%p555_p12) target bundleno = 808 (0x328), region = 44 }
 0x30e   : > { %399 = vst.msk [vmem:[#allocation2] sm:$0x1] %vm398_vm8, %v397_v3  ;;  %s578_s9 = spop %577 }
 0x30f   : > { %v413_v5 = vstv %s578_s9 }
 0x310   : > { %v414_v6 = vadd.f32 %v413_v5, %v400_v4 }
 0x312   : > { %415 = vst.msk [vmem:[#allocation3] sm:$0x1] %vm398_vm8, %v414_v6 }
 0x315   : > { %v420_v8 = vld [vmem:[#allocation2] sm:$0x1] }
 0x319   : > { %v421_v7 = vld [vmem:[#allocation3] sm:$0x1] }
 0x31a   : > { %644 = vrcp.f32 %v421_v7 }
 0x324   : > { %v645_v9 = vpop.eup %644 }
 0x325   : > { %v423_v10 = vmul.f32 %v645_v9, %v420_v8 }
 0x327   : > { %425 = vst.msk [vmem:[#allocation6] sm:$0x1] %vm398_vm8, %v423_v10 }
 0x328 PF: > { %s563_s10 = sshll.u32 %s799_s22, 8  ;;  %s440_s14 = sshll.u32 %s838_s16, 4  ;;  %s864_s14 = int_to_ptr.vmem [resolvable:$true] %s440_s14 }
 0x329   : > { %s861_s13 = scalar_lea.hbm %s935_s4, %s563_s10  ;;  %s868_s15 = scalar_lea.sflag [#allocation5], %s229_s30 }
 0x32a   : > { %s646_s17 = scalar_lea.vmem %s864_s14, 256  ;;  %s744_s23 = smov [#allocation4]  }
 0x32b   : > { %p647_p13 = scmp.ne.s32.totalorder %s864_s14, %s646_s17  ;;  %s650_s25 = sshll.u32 %s744_s23, 4  ;;  %s651_s25 = int_to_ptr.vmem [resolvable:$false] %s650_s25 }
 0x32c   : > { %s652_s26 = scalar_lea.vmem %s651_s25, 512  ;;  %p653_p3 = scmp.lt.s32.totalorder %s864_s14, %s651_s25 }
 0x32d   : > { %p648_p0 = pnand %p647_p13, %p818_p5  ;;  %p654_p4 = scmp.lt.s32.totalorder %s652_s26, %s646_s17 }
 0x32f   : > { %p649_p1 = pneg %p648_p0  ;;  %p655_p7 = por %p654_p4, %p653_p3 }
 0x331   : > { %p656_p8 = pnand %p655_p7, %p649_p1 }
 0x333   : > { %659 = shalt.err (!%p656_p8)
}
 0x334   : > { %s660_s30 = scalar_lea.hbm %s861_s13, 256  ;;  %s664_s7 = scalar_lea.hbm %s935_s4, 512 }
 0x335   : > { %p661_p9 = scmp.ne.s32.totalorder %s861_s13, %s660_s30  ;;  %p665_p12 = scmp.lt.u32.totalorder %s861_s13, %s935_s4 }
 0x336   : > { %p666_p13 = scmp.lt.u32.totalorder %s664_s7, %s660_s30  ;;  %p668_p1 = scmp.lt.u32.totalorder %s660_s30, %s861_s13 }
 0x337   : > { %p662_p10 = pnand %p661_p9, %p818_p5 }
 0x338   : > { %p667_p0 = por %p666_p13, %p665_p12 }
 0x339   : > { %p663_p11 = pneg %p662_p10 }
 0x33a   : > { %p669_p3 = por %p668_p1, %p667_p0 }
 0x33c   : > { %p670_p4 = pnand %p669_p3, %p663_p11 }
 0x33e   : > { %673 = shalt.err (!%p670_p4)
}
 0x33f   : > { %s745_s10 = smov 128   ;;  %s746_s11 = smov 8  }
 0x340   : > { %579 = dma.vmem_to_hbm [thread:$0]  (%p818_p5), %s864_s14, 256, %s861_s13, %s868_s15, %s745_s10, %s745_s10, %s746_s11  }
 0x341   : > { %s747_s12 = smov [#allocation6]  }
 0x342   : > { %s454_s17 = sshll.u32 %s747_s12, 4  ;;  %s455_s17 = int_to_ptr.vmem [resolvable:$true] %s454_s17 }
 0x343   : > { %s674_s23 = scalar_lea.vmem %s455_s17, 16  ;;  %s680_s25 = scalar_lea.vmem %s455_s17, 32 }
 0x344   : > { %p675_p7 = scmp.ne.s32.totalorder %s455_s17, %s674_s23  ;;  %p681_p10 = scmp.lt.s32.totalorder %s455_s17, %s455_s17 }
 0x345   : > { %p682_p11 = scmp.lt.s32.totalorder %s680_s25, %s674_s23 }
 0x346   : > { %p676_p8 = pnand %p675_p7, %p132_p2 }
 0x347   : > { %p683_p12 = por %p682_p11, %p681_p10 }
 0x348   : > { %p677_p9 = pneg %p676_p8 }
 0x34a   : > { %p684_p13 = pnand %p683_p12, %p677_p9 }
 0x34c   : > { %687 = shalt.err (!%p684_p13)
}
 0x34d   : > { %s688_s28 = scalar_lea.hbm %s936_s5, 16 }
 0x34e   : > { %p689_p5 = scmp.ne.s32.totalorder %s936_s5, %s688_s28  ;;  %p694_p3 = scmp.lt.u32.totalorder %s688_s28, %s936_s5 }
 0x350   : > { %p690_p0 = pnand %p689_p5, %p132_p2 }
 0x352   : > { %p691_p1 = pneg %p690_p0 }
 0x354   : > { %p696_p4 = pnand %p694_p3, %p691_p1 }
 0x356   : > { %699 = shalt.err (!%p696_p4)
}
 0x357   : > { %581 = dma.vmem_to_hbm [thread:$0]  (%p132_p2), %s455_s17, 16, %s936_s5, [#allocation7]  }
 0x358   : > { %717 = dma.done.wait (%p132_p2), [#allocation7], 16  }
 0x359   : > { %719 = vsyncadd (%p132_p2), [#allocation7], 4294967280 }
 0x35a PF: > { %p591_p7 = scmp.ge.s32.totalorder %s738_s21, 2  ;;  %s470_s8 = sand.u32 1, %s726_s18  }
 0x35b   : > { %s471_s9 = scalar_lea.sflag [#allocation5], %s470_s8 }
 0x35c   : > { %p586_p8 = pnand %p591_p7, %p822_p6 }
 0x35e   : > { %721 = dma.done.wait (!%p586_p8), %s471_s9, 256  }
 0x35f   : > { %723 = vsyncadd (!%p586_p8), %s471_s9, 4294967040  ;;  %p17_p9 = scmp.ge.s32.totalorder %s803_s24, 4   ;;  %s939_s18 = smov %s730_s19 }
 0x360   : > { %s940_s19 = smov %s734_s20  ;;  %s941_s20 = smov %s814_s27 }
 0x361   : > { %s942_s21 = smov %s803_s24  ;;  %19 = sbr.rel (!%p17_p9) target bundleno = 4 (0x4), region = 90 }
 0x368   :  { %476 = vsyncpa [#allocation5], 1 }
 0x369   :  { %478 = vsyncpa [#allocation5 + $0x1], 1 }
 0x36a   :  { %479 = vsyncpa [#allocation7], 1 }

</bundles_post_ra>
